<compile_context>
chip_gen: v7x
topology: tpu7x:2x2x1
jax: 0.10.0
libtpu: 0.0.40
codegen_flags: <defaults>
</compile_context>

<pallas_src>
import functools

import jax
import jax.numpy as jnp
from jax.experimental import pallas as pl
from jax.experimental.pallas import tpu as pltpu


def _round_up(v, m):
    return ((v + m - 1) // m) * m


def ffn_resident_kernel(x_ref, w1_ref, b1_ref, w2_ref, b2_ref, o_ref):
    """y = relu(x @ W1 + b1) @ W2 + b2 with both weight matrices VMEM-resident."""
    x = x_ref[...].astype(w1_ref.dtype)                       # VPU cast (f32 -> bf16)
    h = jnp.dot(x, w1_ref[...], preferred_element_type=jnp.float32)
    h = jnp.maximum(h + b1_ref[...], 0.0)                     # bias + ReLU in f32
    y = jnp.dot(h.astype(w2_ref.dtype), w2_ref[...],
                preferred_element_type=jnp.float32)
    o_ref[...] = (y + b2_ref[...]).astype(o_ref.dtype)


def ffn_stream_kernel(x_ref, w1_ref, b1_ref, w2_ref, b2_ref, o_ref, *scratch):
    """Streaming fallback: d_ff tiled on grid axis 1 and reduced into an f32
    accumulator (the output block itself when the output dtype is f32)."""
    acc_ref = scratch[0] if scratch else o_ref
    f = pl.program_id(1)

    @pl.when(f == 0)
    def _init():
        acc_ref[...] = jnp.zeros_like(acc_ref)

    x = x_ref[...].astype(w1_ref.dtype)
    h = jnp.dot(x, w1_ref[...], preferred_element_type=jnp.float32)
    h = jnp.maximum(h + b1_ref[...], 0.0)
    acc_ref[...] += jnp.dot(h.astype(w2_ref.dtype), w2_ref[...],
                            preferred_element_type=jnp.float32)

    @pl.when(f == pl.num_programs(1) - 1)
    def _finalize():
        o_ref[...] = (acc_ref[...] + b2_ref[...]).astype(o_ref.dtype)
    # TODO(synk): sweep pl.Buffered(3) on the streamed W1/W2 specs for v5e.


def _vmem_budget_bytes():
    """Generation-aware VMEM budget (v7x has 64 MiB/TC vs 128 MiB on v5e/v6e)."""
    cap = 128 << 20
    try:
        info = pltpu.get_tpu_info()
        cap = int(getattr(info, "vmem_capacity_bytes", cap))
    except Exception:
        pass
    return min(int(cap * 0.7), 96 << 20)


@functools.partial(jax.jit, static_argnames=("tm", "tf", "weight_resident"))
def feed_forward(x, w1, b1, w2, b2, *, tm=None, tf=None, weight_resident=None):
    """x: (B, S, d_model).  w1: (d_model, d_ff), w2: (d_ff, d_model) -- nn.Linear
    weights pre-transposed to (in, out) and ideally pre-cast to bf16 once at
    parameter-setup time.  Biases stay f32."""
    B, S, d_model = x.shape
    d_ff = w1.shape[1]
    M = B * S

    x_item = jnp.dtype(x.dtype).itemsize
    w_item = jnp.dtype(w1.dtype).itemsize
    o_item = x_item
    budget = _vmem_budget_bytes()

    # Estimated VMEM for one pipelined step at row-tile tm_ / d_ff-tile tf_.
    def step_bytes(tm_, tf_, resident_):
        b = 2 * tm_ * d_model * (x_item + o_item)    # double-buffered x / out tiles
        b += tm_ * tf_ * 4                           # f32 hidden tile
        b += tm_ * d_model * 4                       # f32 accumulator / result tile
        if resident_:
            b += 2 * (2 * d_model * d_ff * w_item + (d_ff + d_model) * 4)
        else:
            b += 2 * (2 * d_model * tf_ * w_item + (tf_ + d_model) * 4)
        return b

    if weight_resident is None:
        weight_resident = step_bytes(min(max(M, 8), 256), d_ff, True) <= budget

    # ----- row tile ----------------------------------------------------------
    if tm is None:
        if M <= 128:
            tm = M                                        # one full-extent block
        elif M <= 1024:
            tm = min(512, _round_up(-(-M // 2), 16))      # two blocks (fills both v7x TCs)
        else:
            tm = 512
        tf_probe = d_ff if weight_resident else min(d_ff, 512)
        while tm > 128 and step_bytes(tm, tf_probe, weight_resident) > budget:
            tm = _round_up(tm // 2, 16)
        if M > 1024:
            steps = -(-M // tm)
            if steps % 2:                                  # even step count for v7x 2-TC balance
                tm = max(128, _round_up(-(-M // (steps + 1)), 128))
    grid_m = -(-M // tm)                                   # ragged edge handled by masked writes

    # ----- d_ff tile (streaming path only) -----------------------------------
    if weight_resident:
        tf = d_ff
    elif tf is None:
        tf = d_ff
        for cand in (4096, 2048, 1024, 512, 256, 128):     # multiples of 256 preferred (v6e/v7x MXU)
            if d_ff % cand == 0 and step_bytes(tm, cand, False) <= budget:
                tf = cand
                break
    assert d_ff % tf == 0, "tf must divide d_ff"

    b1r = b1.reshape(1, d_ff).astype(jnp.float32)
    b2r = b2.reshape(1, d_model).astype(jnp.float32)
    x2d = x.reshape(M, d_model)

    # Advisory cost model so XLA can overlap neighbouring ops with the kernel.
    w_pass = 2 * d_model * d_ff * w_item + (d_ff + d_model) * 4
    cost = pl.CostEstimate(
        flops=4 * M * d_model * d_ff,
        transcendentals=0,
        bytes_accessed=M * d_model * (x_item + o_item)
        + w_pass * (1 if weight_resident else grid_m),
    )

    vmem_limit = min(budget, int(step_bytes(tm, tf, weight_resident) * 1.25) + (4 << 20))
    vmem_limit = max(vmem_limit, 16 << 20)

    if weight_resident:
        kernel = ffn_resident_kernel
        grid = (grid_m,)
        in_specs = [
            pl.BlockSpec((tm, d_model), lambda i: (i, 0)),        # x row tile
            pl.BlockSpec((d_model, d_ff), lambda i: (0, 0)),      # W1: fetched once
            pl.BlockSpec((1, d_ff), lambda i: (0, 0)),            # b1
            pl.BlockSpec((d_ff, d_model), lambda i: (0, 0)),      # W2: fetched once
            pl.BlockSpec((1, d_model), lambda i: (0, 0)),         # b2
        ]
        out_specs = pl.BlockSpec((tm, d_model), lambda i: (i, 0))
        scratch_shapes = []
        dims = ("parallel",)
    else:
        kernel = ffn_stream_kernel
        grid = (grid_m, d_ff // tf)
        in_specs = [
            pl.BlockSpec((tm, d_model), lambda i, f: (i, 0)),     # x row tile
            pl.BlockSpec((d_model, tf), lambda i, f: (0, f)),     # W1 slice
            pl.BlockSpec((1, tf), lambda i, f: (0, f)),           # b1 slice
            pl.BlockSpec((tf, d_model), lambda i, f: (f, 0)),     # W2 slice
            pl.BlockSpec((1, d_model), lambda i, f: (0, 0)),      # b2
        ]
        out_specs = pl.BlockSpec((tm, d_model), lambda i, f: (i, 0))
        # f32 outputs double as the reduction accumulator; keep an f32 scratch
        # only for low-precision outputs so they are rounded exactly once.
        scratch_shapes = ([] if x.dtype == jnp.float32
                          else [pltpu.VMEM((tm, d_model), jnp.float32)])
        dims = ("parallel", "arbitrary")

    out2d = pl.pallas_call(
        kernel,
        out_shape=jax.ShapeDtypeStruct((M, d_model), x.dtype),
        grid_spec=pltpu.PrefetchScalarGridSpec(
            num_scalar_prefetch=0,
            grid=grid,
            in_specs=in_specs,
            out_specs=out_specs,
            scratch_shapes=scratch_shapes,
        ),
        compiler_params=pltpu.CompilerParams(
            dimension_semantics=dims,
            vmem_limit_bytes=vmem_limit,
        ),
        cost_estimate=cost,
    )(x2d, w1, b1r, w2, b2r)

    return out2d.reshape(B, S, d_model)


if __name__ == "__main__":
    # Small shapes consistent with the module's FeedForward sublayer.
    batch, seq, d_model, d_ff = 2, 8, 32, 64

    key = jax.random.PRNGKey(0)
    kx, kw1, kb1, kw2, kb2 = jax.random.split(key, 5)

    x = jax.random.normal(kx, (batch, seq, d_model), dtype=jnp.float32)

    # nn.Linear params, pre-transposed to (in, out); weights pre-cast to bf16
    # ONCE here (parameter setup), so the per-call path adds no HBM cast pass.
    w1 = (jax.random.normal(kw1, (d_model, d_ff), dtype=jnp.float32)
          / d_model ** 0.5).astype(jnp.bfloat16)
    b1 = jax.random.normal(kb1, (d_ff,), dtype=jnp.float32) * 0.01
    w2 = (jax.random.normal(kw2, (d_ff, d_model), dtype=jnp.float32)
          / d_ff ** 0.5).astype(jnp.bfloat16)
    b2 = jax.random.normal(kb2, (d_model,), dtype=jnp.float32) * 0.01

    def ref_ffn(xv, w1v, b1v, w2v, b2v):
        h = jnp.maximum(xv @ w1v.astype(jnp.float32) + b1v, 0.0)
        return h @ w2v.astype(jnp.float32) + b2v

    # 1) Main path: weights fully VMEM-resident, 1-D row-parallel grid.
    out = feed_forward(x, w1, b1, w2, b2)
    jax.block_until_ready(out)
    assert out.shape == (batch, seq, d_model)
    assert jnp.allclose(out, ref_ffn(x, w1, b1, w2, b2), atol=5e-2, rtol=5e-2)

    # 2) Forced streaming (d_ff-reduction) fallback with a ragged row count and
    #    tm=8, exercising the pad-free masked-edge path and in-place f32 accum.
    d_ff2 = 256
    kw3, kb3, kw4, kb4 = jax.random.split(kw2, 4)
    w3 = (jax.random.normal(kw3, (d_model, d_ff2), dtype=jnp.float32)
          / d_model ** 0.5).astype(jnp.bfloat16)
    b3 = jax.random.normal(kb3, (d_ff2,), dtype=jnp.float32) * 0.01
    w4 = (jax.random.normal(kw4, (d_ff2, d_model), dtype=jnp.float32)
          / d_ff2 ** 0.5).astype(jnp.bfloat16)
    b4 = jax.random.normal(kb4, (d_model,), dtype=jnp.float32) * 0.01

    x_odd = jax.random.normal(kx, (batch, 5, d_model), dtype=jnp.float32)  # M=10
    out_s = feed_forward(x_odd, w3, b3, w4, b4, tm=8, tf=128, weight_resident=False)
    jax.block_until_ready(out_s)
    assert out_s.shape == (batch, 5, d_model)
    assert jnp.allclose(out_s, ref_ffn(x_odd, w3, b3, w4, b4), atol=5e-2, rtol=5e-2)

    print("KERNEL_OK")
</pallas_src>

<mosaic_0001>
module attributes {stable_mosaic.version = 11 : i64} {
  func.func @ffn_resident_kernel(%arg0: i32, %arg1: memref<16x32xf32, #tpu.memory_space<vmem>>, %arg2: memref<32x64xbf16, #tpu.memory_space<vmem>>, %arg3: memref<1x64xf32, #tpu.memory_space<vmem>>, %arg4: memref<64x32xbf16, #tpu.memory_space<vmem>>, %arg5: memref<1x32xf32, #tpu.memory_space<vmem>>, %arg6: memref<16x32xf32, #tpu.memory_space<vmem>>) attributes {dimension_semantics = [#tpu.dimension_semantics<parallel>], iteration_bounds = array<i64: 1>, scalar_prefetch = 0 : i64, scratch_operands = 0 : i64, tpu.core_type = #tpu.core_type<tc>, window_params = [{transform_indices = @transform_0, window_bounds = array<i64: 16, 32>}, {pipeline_mode = #tpu.pipeline_mode<synchronous>, transform_indices = @transform_1, window_bounds = array<i64: 32, 64>}, {pipeline_mode = #tpu.pipeline_mode<synchronous>, transform_indices = @transform_2, window_bounds = array<i64: 1, 64>}, {pipeline_mode = #tpu.pipeline_mode<synchronous>, transform_indices = @transform_3, window_bounds = array<i64: 64, 32>}, {pipeline_mode = #tpu.pipeline_mode<synchronous>, transform_indices = @transform_4, window_bounds = array<i64: 1, 32>}, {transform_indices = @transform_5, window_bounds = array<i64: 16, 32>}]} {
    %c0 = arith.constant 0 : index
    %c0_0 = arith.constant 0 : index
    %0 = vector.load %arg1[%c0, %c0_0] : memref<16x32xf32, #tpu.memory_space<vmem>>, vector<16x32xf32>
    %1 = arith.truncf %0 : vector<16x32xf32> to vector<16x32xbf16>
    %c0_1 = arith.constant 0 : index
    %c0_2 = arith.constant 0 : index
    %2 = vector.load %arg2[%c0_1, %c0_2] : memref<32x64xbf16, #tpu.memory_space<vmem>>, vector<32x64xbf16>
    %cst = arith.constant dense<0.000000e+00> : vector<16x64xf32>
    %3 = tpu.matmul %1, %2, %cst {dimension_numbers = #tpu.dot_dimension_numbers<[1], [0], [0], [1], [0, 0, 1, 1], [], []>} : vector<16x32xbf16>, vector<32x64xbf16>, vector<16x64xf32> -> vector<16x64xf32>
    %c0_3 = arith.constant 0 : index
    %c0_4 = arith.constant 0 : index
    %4 = vector.load %arg3[%c0_3, %c0_4] : memref<1x64xf32, #tpu.memory_space<vmem>>, vector<1x64xf32>
    %5 = vector.broadcast %4 : vector<1x64xf32> to vector<16x64xf32>
    %6 = arith.addf %3, %5 : vector<16x64xf32>
    %cst_5 = arith.constant 0.000000e+00 : f32
    %7 = vector.broadcast %cst_5 : f32 to vector<16x64xf32>
    %8 = arith.maximumf %6, %7 : vector<16x64xf32>
    %9 = arith.truncf %8 : vector<16x64xf32> to vector<16x64xbf16>
    %c0_6 = arith.constant 0 : index
    %c0_7 = arith.constant 0 : index
    %10 = vector.load %arg4[%c0_6, %c0_7] : memref<64x32xbf16, #tpu.memory_space<vmem>>, vector<64x32xbf16>
    %cst_8 = arith.constant dense<0.000000e+00> : vector<16x32xf32>
    %11 = tpu.matmul %9, %10, %cst_8 {dimension_numbers = #tpu.dot_dimension_numbers<[1], [0], [0], [1], [0, 0, 1, 1], [], []>} : vector<16x64xbf16>, vector<64x32xbf16>, vector<16x32xf32> -> vector<16x32xf32>
    %c0_9 = arith.constant 0 : index
    %c0_10 = arith.constant 0 : index
    %12 = vector.load %arg5[%c0_9, %c0_10] : memref<1x32xf32, #tpu.memory_space<vmem>>, vector<1x32xf32>
    %13 = vector.broadcast %12 : vector<1x32xf32> to vector<16x32xf32>
    %14 = arith.addf %11, %13 : vector<16x32xf32>
    %c0_11 = arith.constant 0 : index
    %c0_12 = arith.constant 0 : index
    %15 = vector.load %arg6[%c0_11, %c0_12] : memref<16x32xf32, #tpu.memory_space<vmem>>, vector<16x32xf32>
    tpu.vector_store %arg6[%c0_11, %c0_12], %14 {strides = array<i32>} : memref<16x32xf32, #tpu.memory_space<vmem>>, vector<16x32xf32>,
    return
  }
  func.func @transform_0(%arg0: i32) -> (i32, i32) {
    %c0_i32 = arith.constant 0 : i32
    %c0_i32_0 = arith.constant 0 : i32
    return %arg0, %c0_i32 : i32, i32
  }
  func.func @transform_1(%arg0: i32) -> (i32, i32) {
    %c0_i32 = arith.constant 0 : i32
    %c0_i32_0 = arith.constant 0 : i32
    %c0_i32_1 = arith.constant 0 : i32
    return %c0_i32, %c0_i32_0 : i32, i32
  }
  func.func @transform_2(%arg0: i32) -> (i32, i32) {
    %c0_i32 = arith.constant 0 : i32
    %c0_i32_0 = arith.constant 0 : i32
    %c0_i32_1 = arith.constant 0 : i32
    return %c0_i32, %c0_i32_0 : i32, i32
  }
  func.func @transform_3(%arg0: i32) -> (i32, i32) {
    %c0_i32 = arith.constant 0 : i32
    %c0_i32_0 = arith.constant 0 : i32
    %c0_i32_1 = arith.constant 0 : i32
    return %c0_i32, %c0_i32_0 : i32, i32
  }
  func.func @transform_4(%arg0: i32) -> (i32, i32) {
    %c0_i32 = arith.constant 0 : i32
    %c0_i32_0 = arith.constant 0 : i32
    %c0_i32_1 = arith.constant 0 : i32
    return %c0_i32, %c0_i32_0 : i32, i32
  }
  func.func @transform_5(%arg0: i32) -> (i32, i32) {
    %c0_i32 = arith.constant 0 : i32
    %c0_i32_0 = arith.constant 0 : i32
    return %arg0, %c0_i32 : i32, i32
  }
}

</mosaic_0001>

<bundles_post_ra>
// kernel: feed_forward.1
= control target key start
LH: loop header
LB: loop body
LE: loop exit
PB: predicated region body
PF: predicated region fallthrough
CT: control target
= control target key end

     0   :  { %v271_v1 = vmov 0.0   ;;  %vm272_vm0 = vmmov 0   ;;  %vm48_vm1 = vcmask 261120   ;;  %s351_s0 = inlined_call_operand.vmem [shape: f32[16,32], index: 0, kind: input, shape index: {}]   ;;  %s352_s1 = inlined_call_operand.vmem [shape: bf16[32,64], index: 1, kind: input, shape index: {}]   ;;  %s353_s2 = inlined_call_operand.vmem [shape: f32[1,64], index: 2, kind: input, shape index: {}]   ;;  %s354_s3 = inlined_call_operand.vmem [shape: bf16[64,32], index: 3, kind: input, shape index: {}]   ;;  %s355_s4 = inlined_call_operand.vmem [shape: f32[1,32], index: 4, kind: input, shape index: {}]   ;;  %s356_s5 = inlined_call_operand.hbm [shape: f32[16,32], index: 5, kind: output, shape index: {}]  }
   0x1   :  { %v241_v0 = vld [vmem:[%s352_s1] sm:$0xff]   ;;  %216 = vmatprep.subr.bf16.mxu0 %v271_v1  ;;  %v242_v2 = vld [vmem:[%s352_s1 + $0x8] sm:$0xff]   ;;  %224 = vmatprep.subr.bf16.mxu1 %v271_v1 }
   0x2   :  { %217 = vmatpush3.bf16.msra.mxu0 %v241_v0  ;;  %220 = vmatprep.mubr.msk.bf16.mxu0 %vm272_vm0, %v271_v1  ;;  %v22_v3 = vld [vmem:[%s351_s0] sm:$0xff]  ;;  %v23_v4 = vld [vmem:[%s351_s0 + $0x8] sm:$0xff] }
   0x3   :  { %218 = vmatprep.subr.bf16.mxu0 %v271_v1  ;;  %v243_v5 = vld [vmem:[%s354_s3] sm:$0xff]   ;;  %232 = vmatprep.mubr.msk.bf16.mxu1 %vm272_vm0, %v271_v1  ;;  %v244_v6 = vld [vmem:[%s354_s3 + $0x8] sm:$0xff]   ;;  %v24_v7 = vpack.c.bf16 %v23_v4, %v22_v3 }
   0x4   :  { %225 = vmatpush3.bf16.msra.mxu1 %v243_v5 }
   0x5   :  { %226 = vmatprep.subr.bf16.mxu1 %v271_v1 }
   0x6   :  { %219 = vmatpush3.bf16.msra.mxu0 %v242_v2 }
   0x7   :  { %10 = vsyncpa [#allocation3], 0  ;;  %v245_v8 = vld [vmem:[%s354_s3 + $0x10] sm:$0xff]   ;;  %v246_v9 = vld [vmem:[%s354_s3 + $0x18] sm:$0xff]   ;;  %vm135_vm2 = vcmask 523264   ;;  %s273_s3 = smov [#allocation2]  }
   0x8   :  { %227 = vmatpush3.bf16.msra.mxu1 %v244_v6  ;;  %v198_v10 = vld [vmem:[%s353_s2] ss:$0 sm:$0xff]  ;;  %s187_s11 = sshll.u32 %s273_s3, 4  ;;  %s188_s11 = int_to_ptr.vmem [resolvable:$true] %s187_s11 }
   0x9   :  { %221 = vmatmul.mubr.msk.bf16.vlgmr.msra.gmra.mrb[0].mxu0 %vm48_vm1, %v24_v7  ;;  %228 = vmatprep.subr.bf16.mxu1 %v271_v1  ;;  %v202_v20 = vld [vmem:[%s355_s4] ss:$0 sm:$0xff]  ;;  %s247_s2 = scalar_lea.vmem %s188_s11, 256  ;;  %p252_p1 = scmp.lt.s32.totalorder %s188_s11, %s188_s11 }
   0xa   :  { %p248_p0 = scmp.ne.s32.totalorder %s188_s11, %s247_s2  ;;  %p253_p2 = scmp.lt.s32.totalorder %s247_s2, %s247_s2 }
   0xc   :  { %229 = vmatpush3.bf16.msra.mxu1 %v245_v8  ;;  %p254_p3 = por %p253_p2, %p252_p1 }
   0xd   :  { %230 = vmatprep.subr.bf16.mxu1 %v271_v1 }
   0xe   :  { %p255_p4 = pnand %p254_p3, %p248_p0 }
  0x10   :  { %231 = vmatpush3.bf16.msra.mxu1 %v246_v9 }
  0xdc   :  { %v86_v11 = vpop.f32.mrb[0].mxu0 }
  0xdd   :  { %v87_v12 = vadd.f32 %v198_v10, %v86_v11  ;;  %v222_v13 = vpop.f32.mrb[1].mxu0 }
  0xde   :  { %v89_v14 = vpop.f32.mrb[2].mxu0 }
  0xdf   :  { %v90_v15 = vadd.f32 %v198_v10, %v89_v14  ;;  %v223_v16 = vpop.f32.mrb[3].mxu0  ;;  %v93_v17 = vmax.f32 %v87_v12, 0.0 }
  0xe1   :  { %v94_v18 = vmax.f32 %v90_v15, 0.0 }
  0xe3   :  { %v95_v19 = vpack.c.bf16 %v94_v18, %v93_v17 }
  0xe5   :  { %233 = vmatmul.mubr.msk.bf16.vlgmr.msra.gmra.mrb[0].mxu1 %vm135_vm2, %v95_v19 }
 0x1b8   :  { %v173_v21 = vpop.f32.mrb[0].mxu1 }
 0x1b9   :  { %v174_v22 = vadd.f32 %v202_v20, %v173_v21  ;;  %v234_v23 = vpop.f32.mrb[1].mxu1 }
 0x1ba   :  { %v176_v24 = vpop.f32.mrb[2].mxu1 }
 0x1bb   :  { %180 = vst.msk [vmem:[#allocation2] sm:$0xff] %vm48_vm1, %v174_v22  ;;  %v177_v25 = vadd.f32 %v202_v20, %v176_v24  ;;  %v235_v26 = vpop.f32.mrb[3].mxu1 }
 0x1bd   :  { %181 = vst.msk [vmem:[#allocation2 + $0x8] sm:$0xff] %vm48_vm1, %v177_v25 }
 0x1be   :  { %258 = shalt.err (!%p255_p4)
}
 0x1bf   :  { %s259_s13 = scalar_lea.hbm %s356_s5, 256 }
 0x1c0   :  { %p260_p5 = scmp.ne.s32.totalorder %s356_s5, %s259_s13  ;;  %p263_p6 = scmp.lt.u32.totalorder %s259_s13, %s356_s5 }
 0x1c2   :  { %p265_p7 = pnand %p263_p6, %p260_p5 }
 0x1c4   :  { %268 = shalt.err (!%p265_p7)
}
 0x1c5   :  { %s274_s18 = smov 128   ;;  %s275_s19 = smov 8  }
 0x1c6   :  { %193 = dma.vmem_to_hbm [thread:$0]  %s188_s11, 256, %s356_s5, [#allocation3], %s274_s18, %s274_s18, %s275_s19  }
 0x1c7   :  { %269 = dma.done.wait [#allocation3], 256  }
 0x1c8   :  { %270 = vsyncadd [#allocation3], 4294967040 }
 0x1c9   :  { %197 = vsyncpa [#allocation3], 1 }

</bundles_post_ra>
